<compile_context>
chip_gen: v6e
topology: v6e:2x2x1
jax: 0.10.0
libtpu: 0.0.40
codegen_flags: <defaults>
</compile_context>

<pallas_src>
import numpy as np
import jax
import jax.numpy as jnp
from jax.experimental import pallas as pl
from jax.experimental.pallas import tpu as pltpu


def _round_up(n, m):
    return ((n + m - 1) // m) * m


# ----------------------------------------------------------------------------
# Pallas kernel: affine coupling flow over the propagated DOFs (padded shapes)
# ----------------------------------------------------------------------------
def _coupling_kernel(x_ref, w1_ref, b1_ref, wst_ref, bst_ref, y2_ref, ld_ref):
    d1p = w1_ref.shape[0]
    d2p = y2_ref.shape[-1]

    x = x_ref[...]                                      # (TB, d1p + d2p) f32
    x1 = x[:, :d1p]                                     # static 128-aligned slice
    x2 = x[:, d1p:]

    # conditioner MLP: bf16 MXU operands, f32 accumulation, tanh on the EUP
    h = jnp.tanh(
        jnp.dot(x1.astype(jnp.bfloat16), w1_ref[...],
                preferred_element_type=jnp.float32)
        + b1_ref[...]
    )                                                   # (TB, Hp) f32

    # fused [s | t] matmul
    st = jnp.dot(h.astype(jnp.bfloat16), wst_ref[...],
                 preferred_element_type=jnp.float32) + bst_ref[...]
    s = st[:, :d2p]                                     # static 128-aligned slice
    t = st[:, d2p:]

    # affine coupling transform + log-det reduction
    # (padded lanes: x2=0, s=0, t=0 -> y2 padded lanes are 0, logdet unaffected)
    y2_ref[...] = (x2 * jnp.exp(s) + t).astype(y2_ref.dtype)
    ld_ref[...] = jnp.sum(s, axis=-1, keepdims=True)    # (TB, 1)


# ----------------------------------------------------------------------------
# Parameter prep: fuse Ws/Wt, pad lane dims to 128, store weights as bf16
# ----------------------------------------------------------------------------
def prepare_coupling_params(params, compute_dtype=jnp.bfloat16):
    d1, H = params["W1"].shape
    d2 = params["Ws"].shape[1]
    d1p = _round_up(d1, 128)
    Hp = _round_up(H, 128)
    d2p = _round_up(d2, 128)

    W1p = jnp.zeros((d1p, Hp), compute_dtype)
    W1p = W1p.at[:d1, :H].set(params["W1"].astype(compute_dtype))
    b1p = jnp.zeros((1, Hp), jnp.float32).at[:, :H].set(params["b1"])

    Wst = jnp.zeros((Hp, 2 * d2p), compute_dtype)
    Wst = Wst.at[:H, :d2].set(params["Ws"].astype(compute_dtype))
    Wst = Wst.at[:H, d2p:d2p + d2].set(params["Wt"].astype(compute_dtype))
    bst = jnp.zeros((1, 2 * d2p), jnp.float32)
    bst = bst.at[:, :d2].set(params["bs"])
    bst = bst.at[:, d2p:d2p + d2].set(params["bt"])

    return dict(W1=W1p, b1=b1p, Wst=Wst, bst=bst,
                d1=d1, d2=d2, H=H, d1p=d1p, Hp=Hp, d2p=d2p)


# ----------------------------------------------------------------------------
# Wrapped flow: returns (y_trans, log_det, n_identity)
#   - the first n_identity propagated DOFs are identity (not materialized)
#   - y_trans covers the remaining (transformed) propagated DOFs
# ----------------------------------------------------------------------------
def coupling_flow_pallas(x_prop, prep, *, max_batch_tile=512):
    B, d_prop = x_prop.shape
    d1, d2 = prep["d1"], prep["d2"]
    assert d_prop == d1 + d2
    d1p, Hp, d2p = prep["d1p"], prep["Hp"], prep["d2p"]

    # batch tile: big enough to pipeline, small enough for v7x's 64 MiB VMEM
    TB = min(max_batch_tile, _round_up(B, 8))
    Bp = _round_up(B, TB)
    n_tiles = Bp // TB

    # pack [x1 | x2] into one zero-padded, lane-dense activation slab
    x_cat = jnp.zeros((Bp, d1p + d2p), x_prop.dtype)
    x_cat = x_cat.at[:B, :d1].set(x_prop[:, :d1])
    x_cat = x_cat.at[:B, d1p:d1p + d2].set(x_prop[:, d1:])

    in_specs = [
        pl.BlockSpec((TB, d1p + d2p), lambda i: (i, 0)),     # activations stream
        pl.BlockSpec((d1p, Hp), lambda i: (0, 0)),            # W1   resident
        pl.BlockSpec((1, Hp), lambda i: (0, 0)),              # b1   resident
        pl.BlockSpec((Hp, 2 * d2p), lambda i: (0, 0)),        # W_st resident
        pl.BlockSpec((1, 2 * d2p), lambda i: (0, 0)),         # b_st resident
    ]
    out_specs = (
        pl.BlockSpec((TB, d2p), lambda i: (i, 0)),            # y2
        pl.BlockSpec((TB, 1), lambda i: (i, 0)),              # logdet
    )
    out_shape = (
        jax.ShapeDtypeStruct((Bp, d2p), x_prop.dtype),
        jax.ShapeDtypeStruct((Bp, 1), jnp.float32),
    )

    # VMEM budget: double-buffered activation/output tiles + resident weights
    tile_bytes = 2 * TB * (d1p + d2p) * 4 + 2 * TB * (d2p + 128) * 4
    weight_bytes = (d1p * Hp + Hp * 2 * d2p) * 2 + (Hp + 2 * d2p) * 4
    vmem_limit = int(min(48 * 1024 * 1024,
                         max(8 * 1024 * 1024, 4 * (tile_bytes + weight_bytes))))

    cost = pl.CostEstimate(
        flops=2 * Bp * (d1p * Hp + Hp * 2 * d2p),
        transcendentals=Bp * (Hp + d2p),
        bytes_accessed=(Bp * (d1p + d2p) * 4                  # activations
                        + weight_bytes                        # weights + biases
                        + Bp * d2p * 4 + Bp * 4),             # y2, logdet
    )

    y2p, ldp = pl.pallas_call(
        _coupling_kernel,
        out_shape=out_shape,
        grid=(n_tiles,),
        in_specs=in_specs,
        out_specs=out_specs,
        compiler_params=pltpu.CompilerParams(
            dimension_semantics=("parallel",),
            vmem_limit_bytes=vmem_limit,
        ),
        cost_estimate=cost,
    )(x_cat, prep["W1"], prep["b1"], prep["Wst"], prep["bst"])

    y_trans = y2p[:B, :d2]
    log_det = ldp[:B, 0]
    return y_trans, log_det, d1


# ----------------------------------------------------------------------------
# PartialFlow wrapper (JAX glue replicating the torch module semantics)
# ----------------------------------------------------------------------------
class PartialFlowJAX:
    """flow_fn(x_prop) must return (y_trans, log_det, n_identity):
    the first n_identity propagated DOFs are identity and y_trans covers the
    rest (use n_identity=0 for a generic flow returning its full output)."""

    def __init__(self, flow_fn, fixed_indices, n_dof, return_partial=False):
        self.flow_fn = flow_fn
        self.return_partial = return_partial
        self.fixed_indices = np.asarray(fixed_indices, dtype=np.int32)
        fixed_set = set(self.fixed_indices.tolist())
        self.propagated_indices = np.asarray(
            [i for i in range(n_dof) if i not in fixed_set], dtype=np.int32)

    def forward(self, x):
        if len(self.fixed_indices) > 0:
            x_prop = x[:, self.propagated_indices]
        else:
            x_prop = x

        y_trans, log_det, n_id = self.flow_fn(x_prop)

        if self.return_partial:
            if n_id == 0:
                y_prop = y_trans
            else:
                y_prop = jnp.concatenate([x_prop[:, :n_id], y_trans], axis=1)
            return y_prop, log_det

        if len(self.fixed_indices) > 0:
            # fixed DOFs AND the identity half of the propagated DOFs already
            # live in x; only scatter the transformed half (minimal HBM traffic)
            y = x.at[:, self.propagated_indices[n_id:]].set(y_trans)
        else:
            if n_id == 0:
                y = y_trans
            else:
                y = jnp.concatenate([x_prop[:, :n_id], y_trans], axis=1)
        return y, log_det


# ----------------------------------------------------------------------------
# Pure-JAX reference (same bf16 MXU feeding, f32 accumulation)
# ----------------------------------------------------------------------------
def _reference_coupling(x_prop, params):
    d1 = params["W1"].shape[0]
    x1, x2 = x_prop[:, :d1], x_prop[:, d1:]
    h = jnp.tanh(
        jnp.dot(x1.astype(jnp.bfloat16), params["W1"].astype(jnp.bfloat16),
                preferred_element_type=jnp.float32) + params["b1"])
    hb = h.astype(jnp.bfloat16)
    s = jnp.dot(hb, params["Ws"].astype(jnp.bfloat16),
                preferred_element_type=jnp.float32) + params["bs"]
    t = jnp.dot(hb, params["Wt"].astype(jnp.bfloat16),
                preferred_element_type=jnp.float32) + params["bt"]
    y_prop = jnp.concatenate([x1, x2 * jnp.exp(s) + t], axis=1)
    return y_prop, jnp.sum(s, axis=-1)


if __name__ == "__main__":
    # small shapes consistent with PartialFlow's forward over (batch, n_dof)
    batch, n_dof, hidden = 8, 16, 32
    fixed_indices = [0, 3, 7, 10]                      # 4 fixed, 12 propagated
    n_prop = n_dof - len(fixed_indices)
    d1 = n_prop // 2
    d2 = n_prop - d1

    key = jax.random.PRNGKey(0)
    kx, k1, k2, k3, k4, k5, k6 = jax.random.split(key, 7)

    x = jax.random.normal(kx, (batch, n_dof), dtype=jnp.float32)

    # deterministic synthetic parameters for the wrapped coupling flow
    params = {
        "W1": 0.1 * jax.random.normal(k1, (d1, hidden), dtype=jnp.float32),
        "b1": 0.01 * jax.random.normal(k2, (1, hidden), dtype=jnp.float32),
        "Ws": 0.1 * jax.random.normal(k3, (hidden, d2), dtype=jnp.float32),
        "bs": 0.01 * jax.random.normal(k4, (1, d2), dtype=jnp.float32),
        "Wt": 0.1 * jax.random.normal(k5, (hidden, d2), dtype=jnp.float32),
        "bt": 0.01 * jax.random.normal(k6, (1, d2), dtype=jnp.float32),
    }

    prep = prepare_coupling_params(params)             # pad + fuse + bf16, once

    partial_flow = PartialFlowJAX(
        flow_fn=lambda xp: coupling_flow_pallas(xp, prep),
        fixed_indices=fixed_indices,
        n_dof=n_dof,
        return_partial=False,
    )

    fwd = jax.jit(partial_flow.forward)
    y, log_det = fwd(x)
    y = jax.block_until_ready(y)
    log_det = jax.block_until_ready(log_det)

    # reference check (full PartialFlow semantics)
    prop_idx = partial_flow.propagated_indices
    y_prop_ref, ld_ref = _reference_coupling(x[:, prop_idx], params)
    y_ref = x.at[:, prop_idx].set(y_prop_ref)

    np.testing.assert_allclose(np.asarray(y), np.asarray(y_ref),
                               rtol=1e-3, atol=1e-3)
    np.testing.assert_allclose(np.asarray(log_det), np.asarray(ld_ref),
                               rtol=1e-3, atol=1e-3)
    # fixed DOFs must pass through untouched
    np.testing.assert_allclose(
        np.asarray(y[:, partial_flow.fixed_indices]),
        np.asarray(x[:, partial_flow.fixed_indices]), rtol=0, atol=0)

    print("KERNEL_OK")
</pallas_src>

<mosaic_0001>
module attributes {stable_mosaic.version = 11 : i64} {
  func.func @_coupling_kernel(%arg0: i32, %arg1: memref<8x256xf32, #tpu.memory_space<vmem>>, %arg2: memref<128x128xbf16, #tpu.memory_space<vmem>>, %arg3: memref<1x128xf32, #tpu.memory_space<vmem>>, %arg4: memref<128x256xbf16, #tpu.memory_space<vmem>>, %arg5: memref<1x256xf32, #tpu.memory_space<vmem>>, %arg6: memref<8x128xf32, #tpu.memory_space<vmem>>, %arg7: memref<8x1xf32, #tpu.memory_space<vmem>>) attributes {dimension_semantics = [#tpu.dimension_semantics<parallel>], iteration_bounds = array<i64: 1>, scalar_prefetch = 0 : i64, scratch_operands = 0 : i64, tpu.core_type = #tpu.core_type<tc>, window_params = [{transform_indices = @transform_0, window_bounds = array<i64: 8, 256>}, {pipeline_mode = #tpu.pipeline_mode<synchronous>, transform_indices = @transform_1, window_bounds = array<i64: 128, 128>}, {pipeline_mode = #tpu.pipeline_mode<synchronous>, transform_indices = @transform_2, window_bounds = array<i64: 1, 128>}, {pipeline_mode = #tpu.pipeline_mode<synchronous>, transform_indices = @transform_3, window_bounds = array<i64: 128, 256>}, {pipeline_mode = #tpu.pipeline_mode<synchronous>, transform_indices = @transform_4, window_bounds = array<i64: 1, 256>}, {transform_indices = @transform_5, window_bounds = array<i64: 8, 128>}, {transform_indices = @transform_6, window_bounds = array<i64: 8, 1>}]} {
    %c0 = arith.constant 0 : index
    %c0_0 = arith.constant 0 : index
    %0 = vector.load %arg1[%c0, %c0_0] : memref<8x256xf32, #tpu.memory_space<vmem>>, vector<8x256xf32>
    %1 = vector.extract_strided_slice %0 {offsets = [0, 0], sizes = [8, 128], strides = [1, 1]} : vector<8x256xf32> to vector<8x128xf32>
    %2 = vector.extract_strided_slice %0 {offsets = [0, 128], sizes = [8, 128], strides = [1, 1]} : vector<8x256xf32> to vector<8x128xf32>
    %3 = arith.truncf %1 : vector<8x128xf32> to vector<8x128xbf16>
    %c0_1 = arith.constant 0 : index
    %c0_2 = arith.constant 0 : index
    %4 = vector.load %arg2[%c0_1, %c0_2] : memref<128x128xbf16, #tpu.memory_space<vmem>>, vector<128x128xbf16>
    %cst = arith.constant dense<0.000000e+00> : vector<8x128xf32>
    %5 = tpu.matmul %3, %4, %cst {dimension_numbers = #tpu.dot_dimension_numbers<[1], [0], [0], [1], [0, 0, 1, 1], [], []>} : vector<8x128xbf16>, vector<128x128xbf16>, vector<8x128xf32> -> vector<8x128xf32>
    %c0_3 = arith.constant 0 : index
    %c0_4 = arith.constant 0 : index
    %6 = vector.load %arg3[%c0_3, %c0_4] : memref<1x128xf32, #tpu.memory_space<vmem>>, vector<1x128xf32>
    %7 = vector.broadcast %6 : vector<1x128xf32> to vector<8x128xf32>
    %8 = arith.addf %5, %7 : vector<8x128xf32>
    %9 = math.tanh %8 : vector<8x128xf32>
    %10 = arith.truncf %9 : vector<8x128xf32> to vector<8x128xbf16>
    %c0_5 = arith.constant 0 : index
    %c0_6 = arith.constant 0 : index
    %11 = vector.load %arg4[%c0_5, %c0_6] : memref<128x256xbf16, #tpu.memory_space<vmem>>, vector<128x256xbf16>
    %cst_7 = arith.constant dense<0.000000e+00> : vector<8x256xf32>
    %12 = tpu.matmul %10, %11, %cst_7 {dimension_numbers = #tpu.dot_dimension_numbers<[1], [0], [0], [1], [0, 0, 1, 1], [], []>} : vector<8x128xbf16>, vector<128x256xbf16>, vector<8x256xf32> -> vector<8x256xf32>
    %c0_8 = arith.constant 0 : index
    %c0_9 = arith.constant 0 : index
    %13 = vector.load %arg5[%c0_8, %c0_9] : memref<1x256xf32, #tpu.memory_space<vmem>>, vector<1x256xf32>
    %14 = vector.broadcast %13 : vector<1x256xf32> to vector<8x256xf32>
    %15 = arith.addf %12, %14 : vector<8x256xf32>
    %16 = vector.extract_strided_slice %15 {offsets = [0, 0], sizes = [8, 128], strides = [1, 1]} : vector<8x256xf32> to vector<8x128xf32>
    %17 = vector.extract_strided_slice %15 {offsets = [0, 128], sizes = [8, 128], strides = [1, 1]} : vector<8x256xf32> to vector<8x128xf32>
    %18 = math.exp %16 : vector<8x128xf32>
    %19 = arith.mulf %2, %18 : vector<8x128xf32>
    %20 = arith.addf %19, %17 : vector<8x128xf32>
    %c0_10 = arith.constant 0 : index
    %c0_11 = arith.constant 0 : index
    %21 = vector.load %arg6[%c0_10, %c0_11] : memref<8x128xf32, #tpu.memory_space<vmem>>, vector<8x128xf32>
    tpu.vector_store %arg6[%c0_10, %c0_11], %20 {strides = array<i32>} : memref<8x128xf32, #tpu.memory_space<vmem>>, vector<8x128xf32>,
    %cst_12 = arith.constant dense<0.000000e+00> : vector<8xf32>
    %22 = vector.multi_reduction <add>, %16, %cst_12 [1] : vector<8x128xf32> to vector<8xf32>
    %23 = vector.shape_cast %22 : vector<8xf32> to vector<8x1xf32>
    %c0_13 = arith.constant 0 : index
    %c0_14 = arith.constant 0 : index
    %24 = vector.load %arg7[%c0_13, %c0_14] : memref<8x1xf32, #tpu.memory_space<vmem>>, vector<8x1xf32>
    tpu.vector_store %arg7[%c0_13, %c0_14], %23 {strides = array<i32>} : memref<8x1xf32, #tpu.memory_space<vmem>>, vector<8x1xf32>,
    return
  }
  func.func @transform_0(%arg0: i32) -> (i32, i32) {
    %c0_i32 = arith.constant 0 : i32
    %c0_i32_0 = arith.constant 0 : i32
    return %arg0, %c0_i32 : i32, i32
  }
  func.func @transform_1(%arg0: i32) -> (i32, i32) {
    %c0_i32 = arith.constant 0 : i32
    %c0_i32_0 = arith.constant 0 : i32
    %c0_i32_1 = arith.constant 0 : i32
    return %c0_i32, %c0_i32_0 : i32, i32
  }
  func.func @transform_2(%arg0: i32) -> (i32, i32) {
    %c0_i32 = arith.constant 0 : i32
    %c0_i32_0 = arith.constant 0 : i32
    %c0_i32_1 = arith.constant 0 : i32
    return %c0_i32, %c0_i32_0 : i32, i32
  }
  func.func @transform_3(%arg0: i32) -> (i32, i32) {
    %c0_i32 = arith.constant 0 : i32
    %c0_i32_0 = arith.constant 0 : i32
    %c0_i32_1 = arith.constant 0 : i32
    return %c0_i32, %c0_i32_0 : i32, i32
  }
  func.func @transform_4(%arg0: i32) -> (i32, i32) {
    %c0_i32 = arith.constant 0 : i32
    %c0_i32_0 = arith.constant 0 : i32
    %c0_i32_1 = arith.constant 0 : i32
    return %c0_i32, %c0_i32_0 : i32, i32
  }
  func.func @transform_5(%arg0: i32) -> (i32, i32) {
    %c0_i32 = arith.constant 0 : i32
    %c0_i32_0 = arith.constant 0 : i32
    return %arg0, %c0_i32 : i32, i32
  }
  func.func @transform_6(%arg0: i32) -> (i32, i32) {
    %c0_i32 = arith.constant 0 : i32
    %c0_i32_0 = arith.constant 0 : i32
    return %arg0, %c0_i32 : i32, i32
  }
}

</mosaic_0001>

<bundles_post_ra>
// kernel: forward.1
= control target key start
LH: loop header
LB: loop body
LE: loop exit
PB: predicated region body
PF: predicated region fallthrough
CT: control target
= control target key end

     0   :  { %v398_v0 = vmov 0.0   ;;  %vm399_vm0 = vmmov 0   ;;  %v400_v25 = vmov 0   ;;  %v157_v36 = vlaneseq  ;;  %s526_s1 = inlined_call_operand.vmem [shape: bf16[128,128], index: 1, kind: input, shape index: {}]   ;;  %s527_s3 = inlined_call_operand.vmem [shape: bf16[128,256], index: 3, kind: input, shape index: {}]   ;;  %s528_s0 = inlined_call_operand.vmem [shape: f32[8,256], index: 0, kind: input, shape index: {}]   ;;  %s529_s2 = inlined_call_operand.vmem [shape: f32[1,128], index: 2, kind: input, shape index: {}]   ;;  %s530_s4 = inlined_call_operand.vmem [shape: f32[1,256], index: 4, kind: input, shape index: {}]   ;;  %s531_s5 = inlined_call_operand.vmem [shape: f32[8,128], index: 5, kind: output, shape index: {0}]   ;;  %s532_s6 = inlined_call_operand.vmem [shape: f32[8,1], index: 6, kind: output, shape index: {1}]  }
   0x1   :  { %339 = vmatprep.subr.bf16.mxu0 %v398_v0  ;;  %v362_v1 = vld [vmem:[%s526_s1 + $0x38] sm:$0xff]   ;;  %355 = vmatprep.mubr.msk.bf16.mxu0 %vm399_vm0, %v398_v0  ;;  %v363_v2 = vld [vmem:[%s526_s1 + $0x30] sm:$0xff]   ;;  %v364_v3 = vld [vmem:[%s526_s1 + $0x28] sm:$0xff]   ;;  %vm295_vm1 = vcmask 7168  }
   0x2   :  { %340 = vmatpush3.bf16.msra.mxu0 %v362_v1  ;;  %v370_v4 = vld [vmem:[%s527_s3 + $0x74] ss:$8 sps:$4 sm:$0xff]   ;;  %v372_v5 = vld [vmem:[%s527_s3 + $0x70] ss:$8 sps:$4 sm:$0xff]   ;;  %v365_v6 = vld [vmem:[%s526_s1 + $0x20] sm:$0xff]   ;;  %279 = vmatprep.mubr.bf16.mxu1 %v400_v25  ;;  %v158_v37 = vshrl.u32 %v157_v36, 7 }
   0x3   :  { %341 = vmatprep.subr.bf16.mxu0 %v398_v0  ;;  %v373_v7 = vld [vmem:[%s527_s3 + $0x64] ss:$8 sps:$4 sm:$0xff]   ;;  %247 = vmatprep.subr.bf16.mxu1 %v370_v4  ;;  %v375_v8 = vld [vmem:[%s527_s3 + $0x60] ss:$8 sps:$4 sm:$0xff]   ;;  %v366_v9 = vld [vmem:[%s526_s1 + $0x18] sm:$0xff]  }
   0x4   :  { %248 = vmatpush1.bf16.msra.mxu1 %v372_v5  ;;  %v376_v10 = vld [vmem:[%s527_s3 + $0x54] ss:$8 sps:$4 sm:$0xff]   ;;  %v378_v11 = vld [vmem:[%s527_s3 + $0x50] ss:$8 sps:$4 sm:$0xff]   ;;  %v379_v12 = vld [vmem:[%s527_s3 + $0x44] ss:$8 sps:$4 sm:$0xff]  }
   0x5   :  { %249 = vmatprep.subr.bf16.mxu1 %v373_v7  ;;  %v367_v13 = vld [vmem:[%s526_s1 + $0x10] sm:$0xff]   ;;  %v368_v14 = vld [vmem:[%s526_s1 + $0x8] sm:$0xff]   ;;  %v369_v15 = vld [vmem:[%s526_s1] sm:$0xff]   ;;  %v159_v38 = vsub.s32 0, %v158_v37  ;;  %v163_v47 = vsub.s32 1, %v158_v37 }
   0x6   :  { %342 = vmatpush3.bf16.msra.mxu0 %v363_v2  ;;  %v23_v16 = vld [vmem:[%s528_s0] sm:$0xff]  ;;  %v382_v19 = vld [vmem:[%s527_s3 + $0x34] ss:$8 sps:$4 sm:$0xff]   ;;  %v384_v20 = vld [vmem:[%s527_s3 + $0x30] ss:$8 sps:$4 sm:$0xff]  }
   0x7   :  { %343 = vmatprep.subr.bf16.mxu0 %v398_v0  ;;  %v25_v17 = vpack.c.bf16 %v23_v16, %v23_v16  ;;  %v381_v18 = vld [vmem:[%s527_s3 + $0x40] ss:$8 sps:$4 sm:$0xff]   ;;  %v385_v21 = vld [vmem:[%s527_s3 + $0x24] ss:$8 sps:$4 sm:$0xff]   ;;  %v388_v23 = vld [vmem:[%s527_s3 + $0x14] ss:$8 sps:$4 sm:$0xff]  }
   0x8   :  { %250 = vmatpush1.bf16.msra.mxu1 %v375_v8  ;;  %v387_v22 = vld [vmem:[%s527_s3 + $0x20] ss:$8 sps:$4 sm:$0xff]   ;;  %v390_v24 = vld [vmem:[%s527_s3 + $0x10] ss:$8 sps:$4 sm:$0xff]   ;;  %v391_v26 = vld [vmem:[%s527_s3 + $0x4] ss:$8 sps:$4 sm:$0xff]  }
   0x9   :  { %251 = vmatprep.subr.bf16.mxu1 %v376_v10  ;;  %v393_v27 = vld [vmem:[%s527_s3] ss:$8 sps:$4 sm:$0xff]  }
   0xa   :  { %344 = vmatpush3.bf16.msra.mxu0 %v364_v3  ;;  %v305_v28 = vld [vmem:[%s529_s2] ss:$0 sm:$0xff]  ;;  %v24_v49 = vld [vmem:[%s528_s0 + $0x8] sm:$0xff] }
   0xb   :  { %345 = vmatprep.subr.bf16.mxu0 %v398_v0  ;;  %v155_v39 = vld [vmem:[%s530_s4] sm:$0x3] }
   0xc   :  { %252 = vmatpush1.bf16.msra.mxu1 %v378_v11  ;;  %v160_v40 = vrot.slane %v155_v39, %v159_v38  ;;  %v164_v48 = vrot.slane %v155_v39, %v163_v47 }
   0xd   :  { %253 = vmatprep.subr.bf16.mxu1 %v379_v12 }
   0xe   :  { %346 = vmatpush3.bf16.msra.mxu0 %v365_v6 }
   0xf   :  { %347 = vmatprep.subr.bf16.mxu0 %v398_v0 }
  0x10   :  { %254 = vmatpush1.bf16.msra.mxu1 %v381_v18 }
  0x11   :  { %255 = vmatprep.subr.bf16.mxu1 %v382_v19 }
  0x12   :  { %348 = vmatpush3.bf16.msra.mxu0 %v366_v9 }
  0x13   :  { %349 = vmatprep.subr.bf16.mxu0 %v398_v0 }
  0x14   :  { %256 = vmatpush1.bf16.msra.mxu1 %v384_v20 }
  0x15   :  { %257 = vmatprep.subr.bf16.mxu1 %v385_v21 }
  0x16   :  { %350 = vmatpush3.bf16.msra.mxu0 %v367_v13 }
  0x17   :  { %351 = vmatprep.subr.bf16.mxu0 %v398_v0 }
  0x18   :  { %258 = vmatpush1.bf16.msra.mxu1 %v387_v22 }
  0x19   :  { %259 = vmatprep.subr.bf16.mxu1 %v388_v23 }
  0x1a   :  { %352 = vmatpush3.bf16.msra.mxu0 %v368_v14 }
  0x1b   :  { %353 = vmatprep.subr.bf16.mxu0 %v398_v0 }
  0x1c   :  { %260 = vmatpush1.bf16.msra.mxu1 %v390_v24 }
  0x1d   :  { %261 = vmatprep.subr.bf16.mxu1 %v391_v26 }
  0x1e   :  { %354 = vmatpush3.bf16.msra.mxu0 %v369_v15 }
  0x20   :  { %262 = vmatpush1.bf16.msra.mxu1 %v393_v27 }
  0x21   :  { %356 = vmatmul.mubr.bf16.vlgmr.msra.gmra.mxu0 %v25_v17 }
  0xe1   :  { %v131_v29 = vpop.f32.mrf.mxu0 }
  0xe2   :  { %v132_v30 = vadd.f32 %v305_v28, %v131_v29 }
  0xe3   :  { %v357_v31 = vpop.f32.mrf.mxu0 }
  0xe4   :  { %394 = vtanh.f32 %v132_v30 }
  0xe5   :  { %v134_v32 = vpop.f32.mrf.mxu0 }
  0xe7   :  { %v358_v33 = vpop.f32.mrf.mxu0 }
  0xf1   :  { %v395_v34 = vpop.eup %394 }
  0xf2   :  { %v138_v35 = vpack.c.bf16 %v395_v34, %v395_v34 }
  0xf4   :  { %280 = vmatmul.mubr.bf16.vlgmr.msra.gmra.mxu1 %v138_v35 }
 0x1b4   :  { %v281_v41 = vpop.f32.mrf.mxu1 }
 0x1b5   :  { %v282_v42 = vadd.f32 %v281_v41, %v160_v40 }
 0x1b6   :  { %v283_v43 = vpop.f32.mrf.mxu1 }
 0x1b7   :  { %v288_v44 = vmul.f32 1.442695, %v282_v42  ;;  %293 = vadd.xlane.f32.xlu0 %v282_v42  ;;  %v284_v51 = vadd.f32 %v283_v43, %v164_v48 }
 0x1b8   :  { %v285_v45 = vpop.f32.mrf.mxu1 }
 0x1b9   :  { %396 = vpow2.f32 %v288_v44 }
 0x1ba   :  { %v286_v46 = vpop.f32.mrf.mxu1 }
 0x1c6   :  { %v397_v50 = vpop.eup %396 }
 0x1c7   :  { %v290_v52 = vmul.f32 %v397_v50, %v24_v49 }
 0x1c9   :  { %v291_v53 = vadd.f32 %v290_v52, %v284_v51 }
 0x1cb   :  { %292 = vst [vmem:[%s531_s5] sm:$0xff] %v291_v53 }
 0x240   :  { %v294_v54 = vpop.xlane.xlu0 %293 }
 0x241   :  { %296 = vst.msk [vmem:[%s532_s6] sm:$0xff] %vm295_vm1, %v294_v54 }

</bundles_post_ra>
